<compile_context>
chip_gen: v5e
topology: v5e:2x2
jax: 0.10.0
libtpu: 0.0.40
codegen_flags: <defaults>
</compile_context>

<pallas_src>
import functools

import jax
import jax.numpy as jnp
import numpy as np
from jax.experimental import pallas as pl
from jax.experimental.pallas import tpu as pltpu


def _pick_time_chunk(T: int, max_chunk: int = 32) -> int:
    """Largest divisor of T that is <= max_chunk."""
    for c in range(min(T, max_chunk), 0, -1):
        if T % c == 0:
            return c
    return 1


def _make_lstm_chunk_kernel(hidden_size: int, time_chunk: int, compute_dtype):
    """LSTM recurrence over one time chunk.  Grid = (T // Tc,), sequential."""
    H = hidden_size
    Tc = time_chunk

    def kernel(g_ref,        # (Tc, B, 4H) f32 pre-activations (x@W_ih^T + bias)
               h0_ref,       # (B, H)  initial hidden state
               c0_ref,       # (B, H)  initial cell state
               whh_ref,      # (H, 4H) recurrent weight (transposed), compute_dtype
               y_ref,        # (Tc, B, H) output chunk
               hn_ref,       # (B, H) final hidden state
               cn_ref,       # (B, H) final cell state
               h_sc, c_sc):  # (B, H) f32 recurrent carries (VMEM scratch)
        @pl.when(pl.program_id(0) == 0)
        def _():
            h_sc[...] = h0_ref[...].astype(jnp.float32)
            c_sc[...] = c0_ref[...].astype(jnp.float32)

        w_hh = whh_ref[...]          # hoisted out of the time loop

        def step(tt, carry):
            h, c = carry
            gates = g_ref[tt] + jnp.dot(h.astype(compute_dtype), w_hh,
                                        preferred_element_type=jnp.float32)
            # PyTorch gate order: input, forget, cell(g), output.
            # (For best layout H should be a multiple of 128 so these lane
            #  slices and the y store are unmasked; correctness holds for any H.)
            i_g = jax.nn.sigmoid(gates[:, 0 * H:1 * H])
            f_g = jax.nn.sigmoid(gates[:, 1 * H:2 * H])
            g_g = jnp.tanh(gates[:, 2 * H:3 * H])
            o_g = jax.nn.sigmoid(gates[:, 3 * H:4 * H])
            c_new = f_g * c + i_g * g_g
            h_new = o_g * jnp.tanh(c_new)
            y_ref[tt] = h_new.astype(y_ref.dtype)
            return (h_new, c_new)

        h_last, c_last = jax.lax.fori_loop(
            0, Tc, step, (h_sc[...], c_sc[...]),
            unroll=True if Tc <= 16 else 2)

        # Carry state to the next chunk (VMEM scratch persists across grid steps).
        h_sc[...] = h_last
        c_sc[...] = c_last
        # Output blocks use a constant index -> resident in VMEM across the
        # grid; only the value after the final chunk is written back to HBM.
        hn_ref[...] = h_last.astype(hn_ref.dtype)
        cn_ref[...] = c_last.astype(cn_ref.dtype)

    return kernel


def _lstm_layer_recurrence(gates, h0, c0, whh_c, *, time_chunk, compute_dtype):
    T, B, G4 = gates.shape
    H = whh_c.shape[0]
    assert G4 == 4 * H and T % time_chunk == 0
    n_chunks = T // time_chunk
    kernel = _make_lstm_chunk_kernel(H, time_chunk, compute_dtype)

    grid_spec = pltpu.PrefetchScalarGridSpec(
        num_scalar_prefetch=0,
        grid=(n_chunks,),
        in_specs=[
            pl.BlockSpec((time_chunk, B, G4), lambda i: (i, 0, 0)),  # G chunk
            pl.BlockSpec((B, H), lambda i: (0, 0)),                  # h0
            pl.BlockSpec((B, H), lambda i: (0, 0)),                  # c0
            pl.BlockSpec((H, G4), lambda i: (0, 0)),                 # W_hh^T
        ],
        out_specs=[
            pl.BlockSpec((time_chunk, B, H), lambda i: (i, 0, 0)),   # y chunk
            pl.BlockSpec((B, H), lambda i: (0, 0)),                  # h_n
            pl.BlockSpec((B, H), lambda i: (0, 0)),                  # c_n
        ],
        scratch_shapes=[
            pltpu.VMEM((B, H), jnp.float32),   # h carry
            pltpu.VMEM((B, H), jnp.float32),   # c carry
        ],
    )
    out_shape = (
        jax.ShapeDtypeStruct((T, B, H), jnp.float32),   # y
        jax.ShapeDtypeStruct((B, H), jnp.float32),      # h_n (this layer)
        jax.ShapeDtypeStruct((B, H), jnp.float32),      # c_n (this layer)
    )
    return pl.pallas_call(
        kernel,
        out_shape=out_shape,
        grid_spec=grid_spec,
        compiler_params=pltpu.CompilerParams(
            dimension_semantics=("arbitrary",),          # true time recurrence
            vmem_limit_bytes=48 * 1024 * 1024),
    )(gates, h0, c0, whh_c)


@functools.partial(jax.jit, static_argnames=("time_chunk", "compute_dtype"))
def _lstm_layer(x, h0, c0, wih_c, whh_c, bias, *, time_chunk, compute_dtype):
    # Hoisted input projection: one large (T*B, D)@(D, 4H) matmul, bias folded in.
    g = jnp.dot(x.astype(compute_dtype), wih_c,
                preferred_element_type=jnp.float32) + bias      # (T, B, 4H) f32
    return _lstm_layer_recurrence(g, h0, c0, whh_c,
                                  time_chunk=time_chunk,
                                  compute_dtype=compute_dtype)


def init_lstm_params(key, input_size, hidden_size, num_layers,
                     forget_bias=None):
    """Deterministic init matching torch.nn.LSTM param shapes / init range."""
    params = []
    bound = 1.0 / np.sqrt(hidden_size)
    for layer in range(num_layers):
        in_sz = input_size if layer == 0 else hidden_size
        key, k1, k2, k3, k4 = jax.random.split(key, 5)
        w_ih = jax.random.uniform(k1, (4 * hidden_size, in_sz), jnp.float32,
                                  -bound, bound)
        w_hh = jax.random.uniform(k2, (4 * hidden_size, hidden_size),
                                  jnp.float32, -bound, bound)
        b_ih = jax.random.uniform(k3, (4 * hidden_size,), jnp.float32,
                                  -bound, bound)
        b_hh = jax.random.uniform(k4, (4 * hidden_size,), jnp.float32,
                                  -bound, bound)
        if forget_bias is not None:
            b_ih = b_ih.at[hidden_size:2 * hidden_size].set(forget_bias)
            b_hh = b_hh.at[hidden_size:2 * hidden_size].set(0.0)
        params.append((w_ih, w_hh, b_ih, b_hh))
    return params


def lstm_drop_forward(x, params, h=None, *, dropout_p=0.0, training=True,
                      seed=0, compute_dtype=jnp.bfloat16, time_chunk=None):
    """Forward of LstmDrop: multi-layer LSTM, then dropout on the output.

    Matches torch semantics: nn.LSTM applies dropout between layers (all but
    the last) when training; the module then applies inplace_dropout to the
    final output.  Net effect: every layer's output sequence gets dropout in
    training mode; h_n / c_n are never dropped.
    """
    num_layers = len(params)
    T, B, _ = x.shape
    H = params[0][1].shape[1]                       # w_hh: (4H, H)
    if h is None:
        h0 = jnp.zeros((num_layers, B, H), jnp.float32)
        c0 = jnp.zeros((num_layers, B, H), jnp.float32)
    else:
        h0, c0 = h
        h0 = h0.astype(jnp.float32)
        c0 = c0.astype(jnp.float32)

    Tc = _pick_time_chunk(T) if time_chunk is None else int(time_chunk)
    if T % Tc != 0:
        raise ValueError(f"time_chunk={Tc} must divide T={T}")

    apply_dropout = training and float(dropout_p) > 0.0
    key = jax.random.PRNGKey(seed)

    out = x.astype(jnp.float32)
    h_n, c_n = [], []
    for layer, (w_ih, w_hh, b_ih, b_hh) in enumerate(params):
        wih_c = jnp.transpose(w_ih).astype(compute_dtype)   # (D, 4H)
        whh_c = jnp.transpose(w_hh).astype(compute_dtype)   # (H, 4H)
        bias = (b_ih + b_hh).astype(jnp.float32)            # (4H,)
        out, hn, cn = _lstm_layer(out, h0[layer], c0[layer], wih_c, whh_c, bias,
                                  time_chunk=Tc, compute_dtype=compute_dtype)
        if apply_dropout:
            # Inverted dropout on the layer *output* only (recurrent state and
            # h_n/c_n stay un-dropped), matching nn.LSTM inter-layer dropout
            # plus the module's inplace_dropout on the final output.
            key, sub = jax.random.split(key)
            keep = jax.random.bernoulli(sub, 1.0 - float(dropout_p), out.shape)
            out = jnp.where(keep, out / (1.0 - float(dropout_p)), 0.0)
        h_n.append(hn)
        c_n.append(cn)

    out = out.astype(x.dtype)
    return out, (jnp.stack(h_n).astype(x.dtype), jnp.stack(c_n).astype(x.dtype))


def _lstm_ref(x, params, h0, c0):
    """Pure-JAX reference (no dropout, f32) for correctness checking."""
    out = x
    h_n, c_n = [], []
    for layer, (w_ih, w_hh, b_ih, b_hh) in enumerate(params):
        def step(carry, x_t):
            h, c = carry
            gates = x_t @ w_ih.T + h @ w_hh.T + b_ih + b_hh
            i, f, g, o = jnp.split(gates, 4, axis=-1)
            c = jax.nn.sigmoid(f) * c + jax.nn.sigmoid(i) * jnp.tanh(g)
            h = jax.nn.sigmoid(o) * jnp.tanh(c)
            return (h, c), h
        (h_last, c_last), ys = jax.lax.scan(step, (h0[layer], c0[layer]), out)
        out = ys
        h_n.append(h_last)
        c_n.append(c_last)
    return out, (jnp.stack(h_n), jnp.stack(c_n))


if __name__ == "__main__":
    # Small, module-consistent shapes.
    T, B = 8, 2                 # seq_len, batch
    input_size = 32
    hidden_size = 32
    num_layers = 2
    dropout = 0.1
    forget_bias = 1.0

    key = jax.random.PRNGKey(0)
    kp, kx = jax.random.split(key)
    params = init_lstm_params(kp, input_size, hidden_size, num_layers,
                              forget_bias=forget_bias)
    x = jax.random.normal(kx, (T, B, input_size), jnp.float32)

    # Correctness check vs pure-JAX scan with dropout disabled (eval mode),
    # f32 compute path.  Tolerance accounts for TPU MXU default matmul
    # precision differences between the Pallas kernel and the XLA reference.
    y_eval, (hn_e, cn_e) = lstm_drop_forward(
        x, params, dropout_p=dropout, training=False,
        compute_dtype=jnp.float32)
    h0 = jnp.zeros((num_layers, B, hidden_size), jnp.float32)
    c0 = jnp.zeros((num_layers, B, hidden_size), jnp.float32)
    y_ref, (hn_r, cn_r) = _lstm_ref(x, params, h0, c0)
    np.testing.assert_allclose(np.asarray(y_eval), np.asarray(y_ref),
                               rtol=2e-2, atol=2e-2)
    np.testing.assert_allclose(np.asarray(hn_e), np.asarray(hn_r),
                               rtol=2e-2, atol=2e-2)
    np.testing.assert_allclose(np.asarray(cn_e), np.asarray(cn_r),
                               rtol=2e-2, atol=2e-2)

    # Training-mode forward: dropout active, bf16 MXU operands with f32
    # accumulation (matches default nn.Module training=True).  NOTE: the
    # dropout mask cannot bit-match torch's RNG.
    y, (h_n, c_n) = lstm_drop_forward(x, params, dropout_p=dropout,
                                      training=True, seed=42,
                                      compute_dtype=jnp.bfloat16)
    jax.block_until_ready((y, h_n, c_n))

    assert y.shape == (T, B, hidden_size)
    assert h_n.shape == (num_layers, B, hidden_size)
    assert c_n.shape == (num_layers, B, hidden_size)
    print("KERNEL_OK")
</pallas_src>

<mosaic_0001>
module attributes {stable_mosaic.version = 11 : i64} {
  func.func @kernel(%arg0: i32, %arg1: memref<8x2x128xf32, #tpu.memory_space<vmem>>, %arg2: memref<2x32xf32, #tpu.memory_space<vmem>>, %arg3: memref<2x32xf32, #tpu.memory_space<vmem>>, %arg4: memref<32x128xf32, #tpu.memory_space<vmem>>, %arg5: memref<8x2x32xf32, #tpu.memory_space<vmem>>, %arg6: memref<2x32xf32, #tpu.memory_space<vmem>>, %arg7: memref<2x32xf32, #tpu.memory_space<vmem>>, %arg8: memref<2x32xf32, #tpu.memory_space<vmem>>, %arg9: memref<2x32xf32, #tpu.memory_space<vmem>>) attributes {dimension_semantics = [#tpu.dimension_semantics<arbitrary>], iteration_bounds = array<i64: 1>, scalar_prefetch = 0 : i64, scratch_operands = 2 : i64, tpu.core_type = #tpu.core_type<tc>, window_params = [{transform_indices = @transform_0, window_bounds = array<i64: 8, 2, 128>}, {pipeline_mode = #tpu.pipeline_mode<synchronous>, transform_indices = @transform_1, window_bounds = array<i64: 2, 32>}, {pipeline_mode = #tpu.pipeline_mode<synchronous>, transform_indices = @transform_2, window_bounds = array<i64: 2, 32>}, {pipeline_mode = #tpu.pipeline_mode<synchronous>, transform_indices = @transform_3, window_bounds = array<i64: 32, 128>}, {transform_indices = @transform_4, window_bounds = array<i64: 8, 2, 32>}, {pipeline_mode = #tpu.pipeline_mode<synchronous>, transform_indices = @transform_5, window_bounds = array<i64: 2, 32>}, {pipeline_mode = #tpu.pipeline_mode<synchronous>, transform_indices = @transform_6, window_bounds = array<i64: 2, 32>}]} {
    %c0_i32 = arith.constant 0 : i32
    %0 = arith.cmpi eq, %arg0, %c0_i32 : i32
    %1 = arith.extui %0 : i1 to i32
    %c0_i32_0 = arith.constant 0 : i32
    %2 = arith.cmpi ne, %1, %c0_i32_0 : i32
    scf.if %2 {
      %c0_78 = arith.constant 0 : index
      %c0_79 = arith.constant 0 : index
      %282 = vector.load %arg2[%c0_78, %c0_79] : memref<2x32xf32, #tpu.memory_space<vmem>>, vector<2x32xf32>
      %c0_80 = arith.constant 0 : index
      %c0_81 = arith.constant 0 : index
      %283 = vector.load %arg8[%c0_80, %c0_81] : memref<2x32xf32, #tpu.memory_space<vmem>>, vector<2x32xf32>
      tpu.vector_store %arg8[%c0_80, %c0_81], %282 {strides = array<i32>} : memref<2x32xf32, #tpu.memory_space<vmem>>, vector<2x32xf32>,
      %c0_82 = arith.constant 0 : index
      %c0_83 = arith.constant 0 : index
      %284 = vector.load %arg3[%c0_82, %c0_83] : memref<2x32xf32, #tpu.memory_space<vmem>>, vector<2x32xf32>
      %c0_84 = arith.constant 0 : index
      %c0_85 = arith.constant 0 : index
      %285 = vector.load %arg9[%c0_84, %c0_85] : memref<2x32xf32, #tpu.memory_space<vmem>>, vector<2x32xf32>
      tpu.vector_store %arg9[%c0_84, %c0_85], %284 {strides = array<i32>} : memref<2x32xf32, #tpu.memory_space<vmem>>, vector<2x32xf32>,
    } else {
    }
    %c0 = arith.constant 0 : index
    %c0_1 = arith.constant 0 : index
    %3 = vector.load %arg4[%c0, %c0_1] : memref<32x128xf32, #tpu.memory_space<vmem>>, vector<32x128xf32>
    %c0_2 = arith.constant 0 : index
    %c0_3 = arith.constant 0 : index
    %4 = vector.load %arg8[%c0_2, %c0_3] : memref<2x32xf32, #tpu.memory_space<vmem>>, vector<2x32xf32>
    %c0_4 = arith.constant 0 : index
    %c0_5 = arith.constant 0 : index
    %5 = vector.load %arg9[%c0_4, %c0_5] : memref<2x32xf32, #tpu.memory_space<vmem>>, vector<2x32xf32>
    %c0_i32_6 = arith.constant 0 : i32
    %6 = arith.index_cast %c0_i32_6 : i32 to index
    %c0_7 = arith.constant 0 : index
    %c0_8 = arith.constant 0 : index
    %7 = vector.load %arg1[%6, %c0_7, %c0_8] : memref<8x2x128xf32, #tpu.memory_space<vmem>>, vector<1x2x128xf32>
    %8 = vector.shape_cast %7 : vector<1x2x128xf32> to vector<2x128xf32>
    %cst = arith.constant dense<0.000000e+00> : vector<2x128xf32>
    %9 = tpu.matmul %4, %3, %cst {dimension_numbers = #tpu.dot_dimension_numbers<[1], [0], [0], [1], [0, 0, 1, 1], [], []>} : vector<2x32xf32>, vector<32x128xf32>, vector<2x128xf32> -> vector<2x128xf32>
    %10 = arith.addf %8, %9 : vector<2x128xf32>
    %11 = vector.extract_strided_slice %10 {offsets = [0, 0], sizes = [2, 32], strides = [1, 1]} : vector<2x128xf32> to vector<2x32xf32>
    %12 = arith.negf %11 : vector<2x32xf32>
    %13 = math.exp %12 : vector<2x32xf32>
    %cst_9 = arith.constant 1.000000e+00 : f32
    %14 = vector.broadcast %cst_9 : f32 to vector<2x32xf32>
    %15 = arith.addf %14, %13 : vector<2x32xf32>
    %16 = arith.divf %14, %15 : vector<2x32xf32>
    %17 = vector.extract_strided_slice %10 {offsets = [0, 32], sizes = [2, 32], strides = [1, 1]} : vector<2x128xf32> to vector<2x32xf32>
    %18 = arith.negf %17 : vector<2x32xf32>
    %19 = math.exp %18 : vector<2x32xf32>
    %cst_10 = arith.constant 1.000000e+00 : f32
    %20 = vector.broadcast %cst_10 : f32 to vector<2x32xf32>
    %21 = arith.addf %20, %19 : vector<2x32xf32>
    %22 = arith.divf %20, %21 : vector<2x32xf32>
    %23 = vector.extract_strided_slice %10 {offsets = [0, 64], sizes = [2, 32], strides = [1, 1]} : vector<2x128xf32> to vector<2x32xf32>
    %24 = math.tanh %23 : vector<2x32xf32>
    %25 = vector.extract_strided_slice %10 {offsets = [0, 96], sizes = [2, 32], strides = [1, 1]} : vector<2x128xf32> to vector<2x32xf32>
    %26 = arith.negf %25 : vector<2x32xf32>
    %27 = math.exp %26 : vector<2x32xf32>
    %cst_11 = arith.constant 1.000000e+00 : f32
    %28 = vector.broadcast %cst_11 : f32 to vector<2x32xf32>
    %29 = arith.addf %28, %27 : vector<2x32xf32>
    %30 = arith.divf %28, %29 : vector<2x32xf32>
    %31 = arith.mulf %22, %5 : vector<2x32xf32>
    %32 = arith.mulf %16, %24 : vector<2x32xf32>
    %33 = arith.addf %31, %32 : vector<2x32xf32>
    %34 = math.tanh %33 : vector<2x32xf32>
    %35 = arith.mulf %30, %34 : vector<2x32xf32>
    %36 = arith.index_cast %c0_i32_6 : i32 to index
    %c0_12 = arith.constant 0 : index
    %c0_13 = arith.constant 0 : index
    %37 = vector.load %arg5[%36, %c0_12, %c0_13] : memref<8x2x32xf32, #tpu.memory_space<vmem>>, vector<1x2x32xf32>
    %38 = vector.shape_cast %37 : vector<1x2x32xf32> to vector<2x32xf32>
    %39 = vector.shape_cast %35 : vector<2x32xf32> to vector<1x2x32xf32>
    tpu.vector_store %arg5[%36, %c0_12, %c0_13], %39 {strides = array<i32>} : memref<8x2x32xf32, #tpu.memory_space<vmem>>, vector<1x2x32xf32>,
    %c1_i32 = arith.constant 1 : i32
    %40 = arith.index_cast %c1_i32 : i32 to index
    %c0_14 = arith.constant 0 : index
    %c0_15 = arith.constant 0 : index
    %41 = vector.load %arg1[%40, %c0_14, %c0_15] : memref<8x2x128xf32, #tpu.memory_space<vmem>>, vector<1x2x128xf32>
    %42 = vector.shape_cast %41 : vector<1x2x128xf32> to vector<2x128xf32>
    %cst_16 = arith.constant dense<0.000000e+00> : vector<2x128xf32>
    %43 = tpu.matmul %35, %3, %cst_16 {dimension_numbers = #tpu.dot_dimension_numbers<[1], [0], [0], [1], [0, 0, 1, 1], [], []>} : vector<2x32xf32>, vector<32x128xf32>, vector<2x128xf32> -> vector<2x128xf32>
    %44 = arith.addf %42, %43 : vector<2x128xf32>
    %45 = vector.extract_strided_slice %44 {offsets = [0, 0], sizes = [2, 32], strides = [1, 1]} : vector<2x128xf32> to vector<2x32xf32>
    %46 = arith.negf %45 : vector<2x32xf32>
    %47 = math.exp %46 : vector<2x32xf32>
    %cst_17 = arith.constant 1.000000e+00 : f32
    %48 = vector.broadcast %cst_17 : f32 to vector<2x32xf32>
    %49 = arith.addf %48, %47 : vector<2x32xf32>
    %50 = arith.divf %48, %49 : vector<2x32xf32>
    %51 = vector.extract_strided_slice %44 {offsets = [0, 32], sizes = [2, 32], strides = [1, 1]} : vector<2x128xf32> to vector<2x32xf32>
    %52 = arith.negf %51 : vector<2x32xf32>
    %53 = math.exp %52 : vector<2x32xf32>
    %cst_18 = arith.constant 1.000000e+00 : f32
    %54 = vector.broadcast %cst_18 : f32 to vector<2x32xf32>
    %55 = arith.addf %54, %53 : vector<2x32xf32>
    %56 = arith.divf %54, %55 : vector<2x32xf32>
    %57 = vector.extract_strided_slice %44 {offsets = [0, 64], sizes = [2, 32], strides = [1, 1]} : vector<2x128xf32> to vector<2x32xf32>
    %58 = math.tanh %57 : vector<2x32xf32>
    %59 = vector.extract_strided_slice %44 {offsets = [0, 96], sizes = [2, 32], strides = [1, 1]} : vector<2x128xf32> to vector<2x32xf32>
    %60 = arith.negf %59 : vector<2x32xf32>
    %61 = math.exp %60 : vector<2x32xf32>
    %cst_19 = arith.constant 1.000000e+00 : f32
    %62 = vector.broadcast %cst_19 : f32 to vector<2x32xf32>
    %63 = arith.addf %62, %61 : vector<2x32xf32>
    %64 = arith.divf %62, %63 : vector<2x32xf32>
    %65 = arith.mulf %56, %33 : vector<2x32xf32>
    %66 = arith.mulf %50, %58 : vector<2x32xf32>
    %67 = arith.addf %65, %66 : vector<2x32xf32>
    %68 = math.tanh %67 : vector<2x32xf32>
    %69 = arith.mulf %64, %68 : vector<2x32xf32>
    %70 = arith.index_cast %c1_i32 : i32 to index
    %c0_20 = arith.constant 0 : index
    %c0_21 = arith.constant 0 : index
    %71 = vector.load %arg5[%70, %c0_20, %c0_21] : memref<8x2x32xf32, #tpu.memory_space<vmem>>, vector<1x2x32xf32>
    %72 = vector.shape_cast %71 : vector<1x2x32xf32> to vector<2x32xf32>
    %73 = vector.shape_cast %69 : vector<2x32xf32> to vector<1x2x32xf32>
    tpu.vector_store %arg5[%70, %c0_20, %c0_21], %73 {strides = array<i32>} : memref<8x2x32xf32, #tpu.memory_space<vmem>>, vector<1x2x32xf32>,
    %c2_i32 = arith.constant 2 : i32
    %74 = arith.index_cast %c2_i32 : i32 to index
    %c0_22 = arith.constant 0 : index
    %c0_23 = arith.constant 0 : index
    %75 = vector.load %arg1[%74, %c0_22, %c0_23] : memref<8x2x128xf32, #tpu.memory_space<vmem>>, vector<1x2x128xf32>
    %76 = vector.shape_cast %75 : vector<1x2x128xf32> to vector<2x128xf32>
    %cst_24 = arith.constant dense<0.000000e+00> : vector<2x128xf32>
    %77 = tpu.matmul %69, %3, %cst_24 {dimension_numbers = #tpu.dot_dimension_numbers<[1], [0], [0], [1], [0, 0, 1, 1], [], []>} : vector<2x32xf32>, vector<32x128xf32>, vector<2x128xf32> -> vector<2x128xf32>
    %78 = arith.addf %76, %77 : vector<2x128xf32>
    %79 = vector.extract_strided_slice %78 {offsets = [0, 0], sizes = [2, 32], strides = [1, 1]} : vector<2x128xf32> to vector<2x32xf32>
    %80 = arith.negf %79 : vector<2x32xf32>
    %81 = math.exp %80 : vector<2x32xf32>
    %cst_25 = arith.constant 1.000000e+00 : f32
    %82 = vector.broadcast %cst_25 : f32 to vector<2x32xf32>
    %83 = arith.addf %82, %81 : vector<2x32xf32>
    %84 = arith.divf %82, %83 : vector<2x32xf32>
    %85 = vector.extract_strided_slice %78 {offsets = [0, 32], sizes = [2, 32], strides = [1, 1]} : vector<2x128xf32> to vector<2x32xf32>
    %86 = arith.negf %85 : vector<2x32xf32>
    %87 = math.exp %86 : vector<2x32xf32>
    %cst_26 = arith.constant 1.000000e+00 : f32
    %88 = vector.broadcast %cst_26 : f32 to vector<2x32xf32>
    %89 = arith.addf %88, %87 : vector<2x32xf32>
    %90 = arith.divf %88, %89 : vector<2x32xf32>
    %91 = vector.extract_strided_slice %78 {offsets = [0, 64], sizes = [2, 32], strides = [1, 1]} : vector<2x128xf32> to vector<2x32xf32>
    %92 = math.tanh %91 : vector<2x32xf32>
    %93 = vector.extract_strided_slice %78 {offsets = [0, 96], sizes = [2, 32], strides = [1, 1]} : vector<2x128xf32> to vector<2x32xf32>
    %94 = arith.negf %93 : vector<2x32xf32>
    %95 = math.exp %94 : vector<2x32xf32>
    %cst_27 = arith.constant 1.000000e+00 : f32
    %96 = vector.broadcast %cst_27 : f32 to vector<2x32xf32>
    %97 = arith.addf %96, %95 : vector<2x32xf32>
    %98 = arith.divf %96, %97 : vector<2x32xf32>
    %99 = arith.mulf %90, %67 : vector<2x32xf32>
    %100 = arith.mulf %84, %92 : vector<2x32xf32>
    %101 = arith.addf %99, %100 : vector<2x32xf32>
    %102 = math.tanh %101 : vector<2x32xf32>
    %103 = arith.mulf %98, %102 : vector<2x32xf32>
    %104 = arith.index_cast %c2_i32 : i32 to index
    %c0_28 = arith.constant 0 : index
    %c0_29 = arith.constant 0 : index
    %105 = vector.load %arg5[%104, %c0_28, %c0_29] : memref<8x2x32xf32, #tpu.memory_space<vmem>>, vector<1x2x32xf32>
    %106 = vector.shape_cast %105 : vector<1x2x32xf32> to vector<2x32xf32>
    %107 = vector.shape_cast %103 : vector<2x32xf32> to vector<1x2x32xf32>
    tpu.vector_store %arg5[%104, %c0_28, %c0_29], %107 {strides = array<i32>} : memref<8x2x32xf32, #tpu.memory_space<vmem>>, vector<1x2x32xf32>,
    %c3_i32 = arith.constant 3 : i32
    %108 = arith.index_cast %c3_i32 : i32 to index
    %c0_30 = arith.constant 0 : index
    %c0_31 = arith.constant 0 : index
    %109 = vector.load %arg1[%108, %c0_30, %c0_31] : memref<8x2x128xf32, #tpu.memory_space<vmem>>, vector<1x2x128xf32>
    %110 = vector.shape_cast %109 : vector<1x2x128xf32> to vector<2x128xf32>
    %cst_32 = arith.constant dense<0.000000e+00> : vector<2x128xf32>
    %111 = tpu.matmul %103, %3, %cst_32 {dimension_numbers = #tpu.dot_dimension_numbers<[1], [0], [0], [1], [0, 0, 1, 1], [], []>} : vector<2x32xf32>, vector<32x128xf32>, vector<2x128xf32> -> vector<2x128xf32>
    %112 = arith.addf %110, %111 : vector<2x128xf32>
    %113 = vector.extract_strided_slice %112 {offsets = [0, 0], sizes = [2, 32], strides = [1, 1]} : vector<2x128xf32> to vector<2x32xf32>
    %114 = arith.negf %113 : vector<2x32xf32>
    %115 = math.exp %114 : vector<2x32xf32>
    %cst_33 = arith.constant 1.000000e+00 : f32
    %116 = vector.broadcast %cst_33 : f32 to vector<2x32xf32>
    %117 = arith.addf %116, %115 : vector<2x32xf32>
    %118 = arith.divf %116, %117 : vector<2x32xf32>
    %119 = vector.extract_strided_slice %112 {offsets = [0, 32], sizes = [2, 32], strides = [1, 1]} : vector<2x128xf32> to vector<2x32xf32>
    %120 = arith.negf %119 : vector<2x32xf32>
    %121 = math.exp %120 : vector<2x32xf32>
    %cst_34 = arith.constant 1.000000e+00 : f32
    %122 = vector.broadcast %cst_34 : f32 to vector<2x32xf32>
    %123 = arith.addf %122, %121 : vector<2x32xf32>
    %124 = arith.divf %122, %123 : vector<2x32xf32>
    %125 = vector.extract_strided_slice %112 {offsets = [0, 64], sizes = [2, 32], strides = [1, 1]} : vector<2x128xf32> to vector<2x32xf32>
    %126 = math.tanh %125 : vector<2x32xf32>
    %127 = vector.extract_strided_slice %112 {offsets = [0, 96], sizes = [2, 32], strides = [1, 1]} : vector<2x128xf32> to vector<2x32xf32>
    %128 = arith.negf %127 : vector<2x32xf32>
    %129 = math.exp %128 : vector<2x32xf32>
    %cst_35 = arith.constant 1.000000e+00 : f32
    %130 = vector.broadcast %cst_35 : f32 to vector<2x32xf32>
    %131 = arith.addf %130, %129 : vector<2x32xf32>
    %132 = arith.divf %130, %131 : vector<2x32xf32>
    %133 = arith.mulf %124, %101 : vector<2x32xf32>
    %134 = arith.mulf %118, %126 : vector<2x32xf32>
    %135 = arith.addf %133, %134 : vector<2x32xf32>
    %136 = math.tanh %135 : vector<2x32xf32>
    %137 = arith.mulf %132, %136 : vector<2x32xf32>
    %138 = arith.index_cast %c3_i32 : i32 to index
    %c0_36 = arith.constant 0 : index
    %c0_37 = arith.constant 0 : index
    %139 = vector.load %arg5[%138, %c0_36, %c0_37] : memref<8x2x32xf32, #tpu.memory_space<vmem>>, vector<1x2x32xf32>
    %140 = vector.shape_cast %139 : vector<1x2x32xf32> to vector<2x32xf32>
    %141 = vector.shape_cast %137 : vector<2x32xf32> to vector<1x2x32xf32>
    tpu.vector_store %arg5[%138, %c0_36, %c0_37], %141 {strides = array<i32>} : memref<8x2x32xf32, #tpu.memory_space<vmem>>, vector<1x2x32xf32>,
    %c4_i32 = arith.constant 4 : i32
    %142 = arith.index_cast %c4_i32 : i32 to index
    %c0_38 = arith.constant 0 : index
    %c0_39 = arith.constant 0 : index
    %143 = vector.load %arg1[%142, %c0_38, %c0_39] : memref<8x2x128xf32, #tpu.memory_space<vmem>>, vector<1x2x128xf32>
    %144 = vector.shape_cast %143 : vector<1x2x128xf32> to vector<2x128xf32>
    %cst_40 = arith.constant dense<0.000000e+00> : vector<2x128xf32>
    %145 = tpu.matmul %137, %3, %cst_40 {dimension_numbers = #tpu.dot_dimension_numbers<[1], [0], [0], [1], [0, 0, 1, 1], [], []>} : vector<2x32xf32>, vector<32x128xf32>, vector<2x128xf32> -> vector<2x128xf32>
    %146 = arith.addf %144, %145 : vector<2x128xf32>
    %147 = vector.extract_strided_slice %146 {offsets = [0, 0], sizes = [2, 32], strides = [1, 1]} : vector<2x128xf32> to vector<2x32xf32>
    %148 = arith.negf %147 : vector<2x32xf32>
    %149 = math.exp %148 : vector<2x32xf32>
    %cst_41 = arith.constant 1.000000e+00 : f32
    %150 = vector.broadcast %cst_41 : f32 to vector<2x32xf32>
    %151 = arith.addf %150, %149 : vector<2x32xf32>
    %152 = arith.divf %150, %151 : vector<2x32xf32>
    %153 = vector.extract_strided_slice %146 {offsets = [0, 32], sizes = [2, 32], strides = [1, 1]} : vector<2x128xf32> to vector<2x32xf32>
    %154 = arith.negf %153 : vector<2x32xf32>
    %155 = math.exp %154 : vector<2x32xf32>
    %cst_42 = arith.constant 1.000000e+00 : f32
    %156 = vector.broadcast %cst_42 : f32 to vector<2x32xf32>
    %157 = arith.addf %156, %155 : vector<2x32xf32>
    %158 = arith.divf %156, %157 : vector<2x32xf32>
    %159 = vector.extract_strided_slice %146 {offsets = [0, 64], sizes = [2, 32], strides = [1, 1]} : vector<2x128xf32> to vector<2x32xf32>
    %160 = math.tanh %159 : vector<2x32xf32>
    %161 = vector.extract_strided_slice %146 {offsets = [0, 96], sizes = [2, 32], strides = [1, 1]} : vector<2x128xf32> to vector<2x32xf32>
    %162 = arith.negf %161 : vector<2x32xf32>
    %163 = math.exp %162 : vector<2x32xf32>
    %cst_43 = arith.constant 1.000000e+00 : f32
    %164 = vector.broadcast %cst_43 : f32 to vector<2x32xf32>
    %165 = arith.addf %164, %163 : vector<2x32xf32>
    %166 = arith.divf %164, %165 : vector<2x32xf32>
    %167 = arith.mulf %158, %135 : vector<2x32xf32>
    %168 = arith.mulf %152, %160 : vector<2x32xf32>
    %169 = arith.addf %167, %168 : vector<2x32xf32>
    %170 = math.tanh %169 : vector<2x32xf32>
    %171 = arith.mulf %166, %170 : vector<2x32xf32>
    %172 = arith.index_cast %c4_i32 : i32 to index
    %c0_44 = arith.constant 0 : index
    %c0_45 = arith.constant 0 : index
    %173 = vector.load %arg5[%172, %c0_44, %c0_45] : memref<8x2x32xf32, #tpu.memory_space<vmem>>, vector<1x2x32xf32>
    %174 = vector.shape_cast %173 : vector<1x2x32xf32> to vector<2x32xf32>
    %175 = vector.shape_cast %171 : vector<2x32xf32> to vector<1x2x32xf32>
    tpu.vector_store %arg5[%172, %c0_44, %c0_45], %175 {strides = array<i32>} : memref<8x2x32xf32, #tpu.memory_space<vmem>>, vector<1x2x32xf32>,
    %c5_i32 = arith.constant 5 : i32
    %176 = arith.index_cast %c5_i32 : i32 to index
    %c0_46 = arith.constant 0 : index
    %c0_47 = arith.constant 0 : index
    %177 = vector.load %arg1[%176, %c0_46, %c0_47] : memref<8x2x128xf32, #tpu.memory_space<vmem>>, vector<1x2x128xf32>
    %178 = vector.shape_cast %177 : vector<1x2x128xf32> to vector<2x128xf32>
    %cst_48 = arith.constant dense<0.000000e+00> : vector<2x128xf32>
    %179 = tpu.matmul %171, %3, %cst_48 {dimension_numbers = #tpu.dot_dimension_numbers<[1], [0], [0], [1], [0, 0, 1, 1], [], []>} : vector<2x32xf32>, vector<32x128xf32>, vector<2x128xf32> -> vector<2x128xf32>
    %180 = arith.addf %178, %179 : vector<2x128xf32>
    %181 = vector.extract_strided_slice %180 {offsets = [0, 0], sizes = [2, 32], strides = [1, 1]} : vector<2x128xf32> to vector<2x32xf32>
    %182 = arith.negf %181 : vector<2x32xf32>
    %183 = math.exp %182 : vector<2x32xf32>
    %cst_49 = arith.constant 1.000000e+00 : f32
    %184 = vector.broadcast %cst_49 : f32 to vector<2x32xf32>
    %185 = arith.addf %184, %183 : vector<2x32xf32>
    %186 = arith.divf %184, %185 : vector<2x32xf32>
    %187 = vector.extract_strided_slice %180 {offsets = [0, 32], sizes = [2, 32], strides = [1, 1]} : vector<2x128xf32> to vector<2x32xf32>
    %188 = arith.negf %187 : vector<2x32xf32>
    %189 = math.exp %188 : vector<2x32xf32>
    %cst_50 = arith.constant 1.000000e+00 : f32
    %190 = vector.broadcast %cst_50 : f32 to vector<2x32xf32>
    %191 = arith.addf %190, %189 : vector<2x32xf32>
    %192 = arith.divf %190, %191 : vector<2x32xf32>
    %193 = vector.extract_strided_slice %180 {offsets = [0, 64], sizes = [2, 32], strides = [1, 1]} : vector<2x128xf32> to vector<2x32xf32>
    %194 = math.tanh %193 : vector<2x32xf32>
    %195 = vector.extract_strided_slice %180 {offsets = [0, 96], sizes = [2, 32], strides = [1, 1]} : vector<2x128xf32> to vector<2x32xf32>
    %196 = arith.negf %195 : vector<2x32xf32>
    %197 = math.exp %196 : vector<2x32xf32>
    %cst_51 = arith.constant 1.000000e+00 : f32
    %198 = vector.broadcast %cst_51 : f32 to vector<2x32xf32>
    %199 = arith.addf %198, %197 : vector<2x32xf32>
    %200 = arith.divf %198, %199 : vector<2x32xf32>
    %201 = arith.mulf %192, %169 : vector<2x32xf32>
    %202 = arith.mulf %186, %194 : vector<2x32xf32>
    %203 = arith.addf %201, %202 : vector<2x32xf32>
    %204 = math.tanh %203 : vector<2x32xf32>
    %205 = arith.mulf %200, %204 : vector<2x32xf32>
    %206 = arith.index_cast %c5_i32 : i32 to index
    %c0_52 = arith.constant 0 : index
    %c0_53 = arith.constant 0 : index
    %207 = vector.load %arg5[%206, %c0_52, %c0_53] : memref<8x2x32xf32, #tpu.memory_space<vmem>>, vector<1x2x32xf32>
    %208 = vector.shape_cast %207 : vector<1x2x32xf32> to vector<2x32xf32>
    %209 = vector.shape_cast %205 : vector<2x32xf32> to vector<1x2x32xf32>
    tpu.vector_store %arg5[%206, %c0_52, %c0_53], %209 {strides = array<i32>} : memref<8x2x32xf32, #tpu.memory_space<vmem>>, vector<1x2x32xf32>,
    %c6_i32 = arith.constant 6 : i32
    %210 = arith.index_cast %c6_i32 : i32 to index
    %c0_54 = arith.constant 0 : index
    %c0_55 = arith.constant 0 : index
    %211 = vector.load %arg1[%210, %c0_54, %c0_55] : memref<8x2x128xf32, #tpu.memory_space<vmem>>, vector<1x2x128xf32>
    %212 = vector.shape_cast %211 : vector<1x2x128xf32> to vector<2x128xf32>
    %cst_56 = arith.constant dense<0.000000e+00> : vector<2x128xf32>
    %213 = tpu.matmul %205, %3, %cst_56 {dimension_numbers = #tpu.dot_dimension_numbers<[1], [0], [0], [1], [0, 0, 1, 1], [], []>} : vector<2x32xf32>, vector<32x128xf32>, vector<2x128xf32> -> vector<2x128xf32>
    %214 = arith.addf %212, %213 : vector<2x128xf32>
    %215 = vector.extract_strided_slice %214 {offsets = [0, 0], sizes = [2, 32], strides = [1, 1]} : vector<2x128xf32> to vector<2x32xf32>
    %216 = arith.negf %215 : vector<2x32xf32>
    %217 = math.exp %216 : vector<2x32xf32>
    %cst_57 = arith.constant 1.000000e+00 : f32
    %218 = vector.broadcast %cst_57 : f32 to vector<2x32xf32>
    %219 = arith.addf %218, %217 : vector<2x32xf32>
    %220 = arith.divf %218, %219 : vector<2x32xf32>
    %221 = vector.extract_strided_slice %214 {offsets = [0, 32], sizes = [2, 32], strides = [1, 1]} : vector<2x128xf32> to vector<2x32xf32>
    %222 = arith.negf %221 : vector<2x32xf32>
    %223 = math.exp %222 : vector<2x32xf32>
    %cst_58 = arith.constant 1.000000e+00 : f32
    %224 = vector.broadcast %cst_58 : f32 to vector<2x32xf32>
    %225 = arith.addf %224, %223 : vector<2x32xf32>
    %226 = arith.divf %224, %225 : vector<2x32xf32>
    %227 = vector.extract_strided_slice %214 {offsets = [0, 64], sizes = [2, 32], strides = [1, 1]} : vector<2x128xf32> to vector<2x32xf32>
    %228 = math.tanh %227 : vector<2x32xf32>
    %229 = vector.extract_strided_slice %214 {offsets = [0, 96], sizes = [2, 32], strides = [1, 1]} : vector<2x128xf32> to vector<2x32xf32>
    %230 = arith.negf %229 : vector<2x32xf32>
    %231 = math.exp %230 : vector<2x32xf32>
    %cst_59 = arith.constant 1.000000e+00 : f32
    %232 = vector.broadcast %cst_59 : f32 to vector<2x32xf32>
    %233 = arith.addf %232, %231 : vector<2x32xf32>
    %234 = arith.divf %232, %233 : vector<2x32xf32>
    %235 = arith.mulf %226, %203 : vector<2x32xf32>
    %236 = arith.mulf %220, %228 : vector<2x32xf32>
    %237 = arith.addf %235, %236 : vector<2x32xf32>
    %238 = math.tanh %237 : vector<2x32xf32>
    %239 = arith.mulf %234, %238 : vector<2x32xf32>
    %240 = arith.index_cast %c6_i32 : i32 to index
    %c0_60 = arith.constant 0 : index
    %c0_61 = arith.constant 0 : index
    %241 = vector.load %arg5[%240, %c0_60, %c0_61] : memref<8x2x32xf32, #tpu.memory_space<vmem>>, vector<1x2x32xf32>
    %242 = vector.shape_cast %241 : vector<1x2x32xf32> to vector<2x32xf32>
    %243 = vector.shape_cast %239 : vector<2x32xf32> to vector<1x2x32xf32>
    tpu.vector_store %arg5[%240, %c0_60, %c0_61], %243 {strides = array<i32>} : memref<8x2x32xf32, #tpu.memory_space<vmem>>, vector<1x2x32xf32>,
    %c7_i32 = arith.constant 7 : i32
    %244 = arith.index_cast %c7_i32 : i32 to index
    %c0_62 = arith.constant 0 : index
    %c0_63 = arith.constant 0 : index
    %245 = vector.load %arg1[%244, %c0_62, %c0_63] : memref<8x2x128xf32, #tpu.memory_space<vmem>>, vector<1x2x128xf32>
    %246 = vector.shape_cast %245 : vector<1x2x128xf32> to vector<2x128xf32>
    %cst_64 = arith.constant dense<0.000000e+00> : vector<2x128xf32>
    %247 = tpu.matmul %239, %3, %cst_64 {dimension_numbers = #tpu.dot_dimension_numbers<[1], [0], [0], [1], [0, 0, 1, 1], [], []>} : vector<2x32xf32>, vector<32x128xf32>, vector<2x128xf32> -> vector<2x128xf32>
    %248 = arith.addf %246, %247 : vector<2x128xf32>
    %249 = vector.extract_strided_slice %248 {offsets = [0, 0], sizes = [2, 32], strides = [1, 1]} : vector<2x128xf32> to vector<2x32xf32>
    %250 = arith.negf %249 : vector<2x32xf32>
    %251 = math.exp %250 : vector<2x32xf32>
    %cst_65 = arith.constant 1.000000e+00 : f32
    %252 = vector.broadcast %cst_65 : f32 to vector<2x32xf32>
    %253 = arith.addf %252, %251 : vector<2x32xf32>
    %254 = arith.divf %252, %253 : vector<2x32xf32>
    %255 = vector.extract_strided_slice %248 {offsets = [0, 32], sizes = [2, 32], strides = [1, 1]} : vector<2x128xf32> to vector<2x32xf32>
    %256 = arith.negf %255 : vector<2x32xf32>
    %257 = math.exp %256 : vector<2x32xf32>
    %cst_66 = arith.constant 1.000000e+00 : f32
    %258 = vector.broadcast %cst_66 : f32 to vector<2x32xf32>
    %259 = arith.addf %258, %257 : vector<2x32xf32>
    %260 = arith.divf %258, %259 : vector<2x32xf32>
    %261 = vector.extract_strided_slice %248 {offsets = [0, 64], sizes = [2, 32], strides = [1, 1]} : vector<2x128xf32> to vector<2x32xf32>
    %262 = math.tanh %261 : vector<2x32xf32>
    %263 = vector.extract_strided_slice %248 {offsets = [0, 96], sizes = [2, 32], strides = [1, 1]} : vector<2x128xf32> to vector<2x32xf32>
    %264 = arith.negf %263 : vector<2x32xf32>
    %265 = math.exp %264 : vector<2x32xf32>
    %cst_67 = arith.constant 1.000000e+00 : f32
    %266 = vector.broadcast %cst_67 : f32 to vector<2x32xf32>
    %267 = arith.addf %266, %265 : vector<2x32xf32>
    %268 = arith.divf %266, %267 : vector<2x32xf32>
    %269 = arith.mulf %260, %237 : vector<2x32xf32>
    %270 = arith.mulf %254, %262 : vector<2x32xf32>
    %271 = arith.addf %269, %270 : vector<2x32xf32>
    %272 = math.tanh %271 : vector<2x32xf32>
    %273 = arith.mulf %268, %272 : vector<2x32xf32>
    %274 = arith.index_cast %c7_i32 : i32 to index
    %c0_68 = arith.constant 0 : index
    %c0_69 = arith.constant 0 : index
    %275 = vector.load %arg5[%274, %c0_68, %c0_69] : memref<8x2x32xf32, #tpu.memory_space<vmem>>, vector<1x2x32xf32>
    %276 = vector.shape_cast %275 : vector<1x2x32xf32> to vector<2x32xf32>
    %277 = vector.shape_cast %273 : vector<2x32xf32> to vector<1x2x32xf32>
    tpu.vector_store %arg5[%274, %c0_68, %c0_69], %277 {strides = array<i32>} : memref<8x2x32xf32, #tpu.memory_space<vmem>>, vector<1x2x32xf32>,
    %c8_i32 = arith.constant 8 : i32
    %c0_70 = arith.constant 0 : index
    %c0_71 = arith.constant 0 : index
    %278 = vector.load %arg8[%c0_70, %c0_71] : memref<2x32xf32, #tpu.memory_space<vmem>>, vector<2x32xf32>
    tpu.vector_store %arg8[%c0_70, %c0_71], %273 {strides = array<i32>} : memref<2x32xf32, #tpu.memory_space<vmem>>, vector<2x32xf32>,
    %c0_72 = arith.constant 0 : index
    %c0_73 = arith.constant 0 : index
    %279 = vector.load %arg9[%c0_72, %c0_73] : memref<2x32xf32, #tpu.memory_space<vmem>>, vector<2x32xf32>
    tpu.vector_store %arg9[%c0_72, %c0_73], %271 {strides = array<i32>} : memref<2x32xf32, #tpu.memory_space<vmem>>, vector<2x32xf32>,
    %c0_74 = arith.constant 0 : index
    %c0_75 = arith.constant 0 : index
    %280 = vector.load %arg6[%c0_74, %c0_75] : memref<2x32xf32, #tpu.memory_space<vmem>>, vector<2x32xf32>
    tpu.vector_store %arg6[%c0_74, %c0_75], %273 {strides = array<i32>} : memref<2x32xf32, #tpu.memory_space<vmem>>, vector<2x32xf32>,
    %c0_76 = arith.constant 0 : index
    %c0_77 = arith.constant 0 : index
    %281 = vector.load %arg7[%c0_76, %c0_77] : memref<2x32xf32, #tpu.memory_space<vmem>>, vector<2x32xf32>
    tpu.vector_store %arg7[%c0_76, %c0_77], %271 {strides = array<i32>} : memref<2x32xf32, #tpu.memory_space<vmem>>, vector<2x32xf32>,
    return
  }
  func.func @transform_0(%arg0: i32) -> (i32, i32, i32) {
    %c0_i32 = arith.constant 0 : i32
    %c0_i32_0 = arith.constant 0 : i32
    %c0_i32_1 = arith.constant 0 : i32
    return %arg0, %c0_i32, %c0_i32_0 : i32, i32, i32
  }
  func.func @transform_1(%arg0: i32) -> (i32, i32) {
    %c0_i32 = arith.constant 0 : i32
    %c0_i32_0 = arith.constant 0 : i32
    %c0_i32_1 = arith.constant 0 : i32
    return %c0_i32, %c0_i32_0 : i32, i32
  }
  func.func @transform_2(%arg0: i32) -> (i32, i32) {
    %c0_i32 = arith.constant 0 : i32
    %c0_i32_0 = arith.constant 0 : i32
    %c0_i32_1 = arith.constant 0 : i32
    return %c0_i32, %c0_i32_0 : i32, i32
  }
  func.func @transform_3(%arg0: i32) -> (i32, i32) {
    %c0_i32 = arith.constant 0 : i32
    %c0_i32_0 = arith.constant 0 : i32
    %c0_i32_1 = arith.constant 0 : i32
    return %c0_i32, %c0_i32_0 : i32, i32
  }
  func.func @transform_4(%arg0: i32) -> (i32, i32, i32) {
    %c0_i32 = arith.constant 0 : i32
    %c0_i32_0 = arith.constant 0 : i32
    %c0_i32_1 = arith.constant 0 : i32
    return %arg0, %c0_i32, %c0_i32_0 : i32, i32, i32
  }
  func.func @transform_5(%arg0: i32) -> (i32, i32) {
    %c0_i32 = arith.constant 0 : i32
    %c0_i32_0 = arith.constant 0 : i32
    %c0_i32_1 = arith.constant 0 : i32
    return %c0_i32, %c0_i32_0 : i32, i32
  }
  func.func @transform_6(%arg0: i32) -> (i32, i32) {
    %c0_i32 = arith.constant 0 : i32
    %c0_i32_0 = arith.constant 0 : i32
    %c0_i32_1 = arith.constant 0 : i32
    return %c0_i32, %c0_i32_0 : i32, i32
  }
}

</mosaic_0001>

<bundles_post_ra>
// kernel: _lstm_layer.1
= control target key start
LH: loop header
LB: loop body
LE: loop exit
PB: predicated region body
PF: predicated region fallthrough
CT: control target
= control target key end

     0   :  { %12 = vsyncpa [#allocation5], 0  ;;  %vm27_vm0 = vcmask 254976   ;;  %s963_s0 = inlined_call_operand.vmem [shape: f32[8,2,128], index: 0, kind: input, shape index: {}]   ;;  %s964_s1 = inlined_call_operand.vmem [shape: f32[2,32], index: 1, kind: input, shape index: {}]   ;;  %s965_s2 = inlined_call_operand.vmem [shape: f32[2,32], index: 2, kind: input, shape index: {}]   ;;  %s966_s3 = inlined_call_operand.vmem [shape: f32[32,128], index: 3, kind: input, shape index: {}]   ;;  %s967_s4 = inlined_call_operand.hbm [shape: f32[8,2,32], index: 4, kind: output, shape index: {0}]   ;;  %s968_s5 = inlined_call_operand.hbm [shape: f32[2,32], index: 5, kind: output, shape index: {1}]   ;;  %s969_s6 = inlined_call_operand.hbm [shape: f32[2,32], index: 6, kind: output, shape index: {2}]  }
   0x1   :  { %v34_v0 = vld [vmem:[%s966_s3 + $0x18] sm:$0xff]  ;;  %v33_v1 = vld [vmem:[%s966_s3 + $0x10] sm:$0xff]  ;;  %v26_v2 = vld [vmem:[%s964_s1] sm:$0x3] }
   0x2   :  { %54 = vmatpush.msra.mxu0 %v34_v0  ;;  %126 = vmatpush.msra.mxu1 %v34_v0  ;;  %v32_v3 = vld [vmem:[%s966_s3 + $0x8] sm:$0xff]  ;;  %28 = vst.msk [vmem:[#allocation2] sm:$0x3] %vm27_vm0, %v26_v2 }
   0x3   :  { %194 = vmatpush.msra.mxu2 %v34_v0  ;;  %262 = vmatpush.msra.mxu3 %v34_v0 }
   0x4   :  { %13 = vsyncpa [#allocation7], 0  ;;  %55 = vmatpush.msra.mxu0 %v33_v1  ;;  %127 = vmatpush.msra.mxu1 %v33_v1  ;;  %v31_v4 = vld [vmem:[%s966_s3] sm:$0xff]  ;;  %vm38_vm1 = vcmask 261120   ;;  %s813_s9 = smov 64   ;;  %s814_s10 = smov 32  }
   0x5   :  { %195 = vmatpush.msra.mxu2 %v33_v1  ;;  %263 = vmatpush.msra.mxu3 %v33_v1  ;;  %v29_v6 = vld [vmem:[%s965_s2] sm:$0x3]  ;;  %v645_v35 = vld [vmem:[%s963_s0 + $0x2] sm:$0x3]  ;;  %v648_v61 = vld [vmem:[%s963_s0 + $0x4] sm:$0x3] }
   0x6   :  { %56 = vmatpush.msra.mxu0 %v32_v3  ;;  %128 = vmatpush.msra.mxu1 %v32_v3  ;;  %30 = vst.msk [vmem:[#allocation3] sm:$0x3] %vm27_vm0, %v29_v6  ;;  %v37_v7 = vld [vmem:[%s963_s0] sm:$0x3]  ;;  %s600_s26 = sshll.u32 %s967_s4, 4  ;;  %s816_s27 = smov [#allocation6]   ;;  %s601_s26 = int_to_ptr.hbm [resolvable:$true] %s600_s26 }
   0x7   :  { %196 = vmatpush.msra.mxu2 %v32_v3  ;;  %264 = vmatpush.msra.mxu3 %v32_v3  ;;  %s612_s28 = sshll.u32 %s816_s27, 4  ;;  %s817_s29 = smov [#allocation4]   ;;  %s613_s28 = int_to_ptr.vmem [resolvable:$true] %s612_s28 }
   0x8   :  { %57 = vmatpush.msra.mxu0 %v31_v4  ;;  %129 = vmatpush.msra.mxu1 %v31_v4  ;;  %s598_s30 = sshll.u32 %s817_s29, 4  ;;  %s614_s7 = sshll.u32 %s968_s5, 4  ;;  %s599_s30 = int_to_ptr.vmem [resolvable:$true] %s598_s30  ;;  %s615_s7 = int_to_ptr.hbm [resolvable:$true] %s614_s7 }
   0x9   :  { %197 = vmatpush.msra.mxu2 %v31_v4  ;;  %265 = vmatpush.msra.mxu3 %v31_v4  ;;  %v35_v5 = vld [vmem:[#allocation2] sm:$0x3]  ;;  %s818_s8 = smov [#allocation8]   ;;  %s625_s12 = sshll.u32 %s969_s6, 4  ;;  %s626_s12 = int_to_ptr.hbm [resolvable:$true] %s625_s12 }
   0xa   :  { %330 = vmatpush.msrb.mxu0 %v34_v0  ;;  %398 = vmatpush.msrb.mxu1 %v34_v0  ;;  %s819_s4 = smov 2  }
   0xb   :  { %643 = vmatmul.msk.f32.vlgmr.msra.gmra.mxu0 %vm38_vm1, %v35_v5  ;;  %466 = vmatpush.msrb.mxu2 %v34_v0 }
   0xc   :  { %331 = vmatpush.msrb.mxu0 %v33_v1  ;;  %399 = vmatpush.msrb.mxu1 %v33_v1 }
   0xd   :  { %467 = vmatpush.msrb.mxu2 %v33_v1  ;;  %534 = vmatpush.msrb.mxu3 %v34_v0  ;;  %v36_v11 = vld [vmem:[#allocation3] sm:$0x3] }
   0xe   :  { %332 = vmatpush.msrb.mxu0 %v32_v3  ;;  %400 = vmatpush.msrb.mxu1 %v32_v3 }
   0xf   :  { %468 = vmatpush.msrb.mxu2 %v32_v3  ;;  %535 = vmatpush.msrb.mxu3 %v33_v1 }
  0x10   :  { %333 = vmatpush.msrb.mxu0 %v31_v4  ;;  %401 = vmatpush.msrb.mxu1 %v31_v4 }
  0x11   :  { %469 = vmatpush.msrb.mxu2 %v31_v4  ;;  %536 = vmatpush.msrb.mxu3 %v32_v3 }
  0x13   :  { %537 = vmatpush.msrb.mxu3 %v31_v4 }
  0x88   :  { %v59_v8 = vpop.f32.mrf.mxu0 }
  0x89   :  { %v62_v9 = vadd.f32 %v59_v8, %v37_v7 }
  0x8b   :  { %673 = vtanh.f32 %v62_v9  ;;  %v644_v12 = vmul.f32 -1.442695, %v62_v9 }
  0x8d   :  { %675 = vpow2.f32 %v644_v12 }
  0x91   :  { %v674_v10 = vpop.eup %673 }
  0x92   :  { %89 = vrot.lane.b32.xlu0 %v674_v10, %s813_s9 }
  0x93   :  { %v676_v13 = vpop.eup %675 }
  0x94   :  { %v66_v14 = vadd.f32 1.0, %v676_v13 }
  0x96   :  { %677 = vrcp.f32 %v66_v14  ;;  %v78_v20 = vand.u32 2147483648, %v66_v14  ;;  %vm72_vm3 = vweird.f32 %v66_v14  ;;  %v76_v21 = vand.u32 2147483647, %v66_v14 }
  0x98   :  { %v79_v23 = vor.u32 1.1754944e-38, %v78_v20  ;;  %vm77_vm5 = vcmp.eq.f32.partialorder %v76_v21, 8.507059e+37 }
  0x9a   :  { %84 = vrot.lane.b32.xlu0 %v36_v11, %s814_s10 }
  0x9c   :  { %v678_v15 = vpop.eup %677 }
  0x9d   :  { %v68_v16 = vmul.f32 %v678_v15, %v66_v14  ;;  %vm73_vm2 = vweird.f32 %v678_v15 }
  0x9e   :  { %vm74_vm4 = vmor %vm72_vm3, %vm73_vm2 }
  0x9f   :  { %v69_v17 = vsub.f32 1.0, %v68_v16 }
  0xa1   :  { %v70_v18 = vmul.f32 %v678_v15, %v69_v17 }
  0xa3   :  { %v71_v19 = vadd.f32 %v678_v15, %v70_v18 }
  0xa5   :  { %v75_v22 = vsel %vm74_vm4, %v678_v15, %v71_v19 }
  0xa6   :  { %v80_v25 = vsel %vm77_vm5, %v79_v23, %v75_v22  ;;  %v651_v23 = vld [vmem:[%s963_s0 + $0x6] sm:$0x3] }
 0x104   :  { %v90_v24 = vpop.permute.xlu0 %89 }
 0x105   :  { %v92_v26 = vmul.f32 %v90_v24, %v80_v25 }
 0x107   :  { %94 = vrot.lane.b32.xlu1 %v92_v26, %s814_s10 }
 0x10c   :  { %v85_v27 = vpop.permute.xlu0 %84 }
 0x10d   :  { %v87_v28 = vmul.f32 %v85_v27, %v80_v25 }
 0x179   :  { %v95_v29 = vpop.permute.xlu1 %94 }
 0x17a   :  { %v97_v30 = vadd.f32 %v95_v29, %v87_v28 }
 0x17c   :  { %679 = vtanh.f32 %v97_v30 }
 0x182   :  { %v680_v31 = vpop.eup %679 }
 0x183   :  { %100 = vrot.lane.b32.xlu1 %v680_v31, %s813_s9 }
 0x1f5   :  { %v101_v32 = vpop.permute.xlu1 %100 }
 0x1f6   :  { %v103_v33 = vmul.f32 %v101_v32, %v80_v25 }
 0x1f8   :  { %105 = vrot.lane.b32.xlu2 %v103_v33, %s814_s10 }
 0x252   :  { %v106_v34 = vpop.permute.xlu2 %105 }
 0x253   :  { %109 = vst.msk [vmem:[#allocation4] sm:$0x3] %vm27_vm0, %v106_v34  ;;  %646 = vmatmul.msk.f32.vlgmr.msra.gmra.mxu1 %vm38_vm1, %v106_v34 }
 0x2d0   :  { %v131_v36 = vpop.f32.mrf.mxu1 }
 0x2d1   :  { %v134_v37 = vadd.f32 %v645_v35, %v131_v36 }
 0x2d3   :  { %681 = vtanh.f32 %v134_v37  ;;  %v647_v39 = vmul.f32 -1.442695, %v134_v37 }
 0x2d5   :  { %683 = vpow2.f32 %v647_v39 }
 0x2d9   :  { %v682_v38 = vpop.eup %681 }
 0x2da   :  { %157 = vrot.lane.b32.xlu2 %v682_v38, %s813_s9 }
 0x2db   :  { %v684_v40 = vpop.eup %683 }
 0x2dc   :  { %v138_v41 = vadd.f32 1.0, %v684_v40 }
 0x2de   :  { %685 = vrcp.f32 %v138_v41  ;;  %v150_v47 = vand.u32 2147483648, %v138_v41  ;;  %vm144_vm7 = vweird.f32 %v138_v41  ;;  %v148_v48 = vand.u32 2147483647, %v138_v41 }
 0x2e0   :  { %v151_v50 = vor.u32 1.1754944e-38, %v150_v47  ;;  %vm149_vm9 = vcmp.eq.f32.partialorder %v148_v48, 8.507059e+37 }
 0x2e4   :  { %v686_v42 = vpop.eup %685 }
 0x2e5   :  { %v140_v43 = vmul.f32 %v686_v42, %v138_v41  ;;  %vm145_vm6 = vweird.f32 %v686_v42 }
 0x2e6   :  { %vm146_vm8 = vmor %vm144_vm7, %vm145_vm6 }
 0x2e7   :  { %v141_v44 = vsub.f32 1.0, %v140_v43 }
 0x2e9   :  { %v142_v45 = vmul.f32 %v686_v42, %v141_v44 }
 0x2eb   :  { %v143_v46 = vadd.f32 %v686_v42, %v142_v45 }
 0x2ed   :  { %v147_v49 = vsel %vm146_vm8, %v686_v42, %v143_v46 }
 0x2ee   :  { %v152_v52 = vsel %vm149_vm9, %v151_v50, %v147_v49  ;;  %v654_v49 = vld [vmem:[%s963_s0 + $0x8] sm:$0x3] }
 0x2ef   :  { %v155_v54 = vmul.f32 %v152_v52, %v97_v30 }
 0x334   :  { %v158_v51 = vpop.permute.xlu2 %157 }
 0x335   :  { %v160_v53 = vmul.f32 %v158_v51, %v152_v52 }
 0x337   :  { %162 = vrot.lane.b32.xlu0 %v160_v53, %s814_s10 }
 0x3a9   :  { %v163_v55 = vpop.permute.xlu0 %162 }
 0x3aa   :  { %v165_v56 = vadd.f32 %v163_v55, %v155_v54 }
 0x3ac   :  { %687 = vtanh.f32 %v165_v56 }
 0x3b2   :  { %v688_v57 = vpop.eup %687 }
 0x3b3   :  { %168 = vrot.lane.b32.xlu1 %v688_v57, %s813_s9 }
 0x425   :  { %v169_v58 = vpop.permute.xlu1 %168 }
 0x426   :  { %v171_v59 = vmul.f32 %v169_v58, %v152_v52 }
 0x428   :  { %173 = vrot.lane.b32.xlu2 %v171_v59, %s814_s10 }
 0x482   :  { %v174_v60 = vpop.permute.xlu2 %173 }
 0x483   :  { %177 = vst.msk [vmem:[#allocation4 + $0x2] sm:$0x3] %vm27_vm0, %v174_v60  ;;  %649 = vmatmul.msk.f32.vlgmr.msra.gmra.mxu2 %vm38_vm1, %v174_v60 }
 0x506   :  { %v199_v62 = vpop.f32.mrf.mxu2 }
 0x507   :  { %v202_v63 = vadd.f32 %v648_v61, %v199_v62 }
 0x509   :  { %689 = vtanh.f32 %v202_v63  ;;  %v650_v1 = vmul.f32 -1.442695, %v202_v63 }
 0x50b   :  { %691 = vpow2.f32 %v650_v1 }
 0x50f   :  { %v690_v0 = vpop.eup %689 }
 0x510   :  { %225 = vrot.lane.b32.xlu0 %v690_v0, %s813_s9 }
 0x511   :  { %v692_v2 = vpop.eup %691 }
 0x512   :  { %v206_v3 = vadd.f32 1.0, %v692_v2 }
 0x514   :  { %693 = vrcp.f32 %v206_v3  ;;  %v218_v9 = vand.u32 2147483648, %v206_v3  ;;  %vm212_vm11 = vweird.f32 %v206_v3  ;;  %v216_v10 = vand.u32 2147483647, %v206_v3 }
 0x516   :  { %v219_v12 = vor.u32 1.1754944e-38, %v218_v9  ;;  %vm217_vm13 = vcmp.eq.f32.partialorder %v216_v10, 8.507059e+37 }
 0x51a   :  { %v694_v4 = vpop.eup %693 }
 0x51b   :  { %v208_v5 = vmul.f32 %v694_v4, %v206_v3  ;;  %vm213_vm10 = vweird.f32 %v694_v4 }
 0x51c   :  { %vm214_vm12 = vmor %vm212_vm11, %vm213_vm10 }
 0x51d   :  { %v209_v6 = vsub.f32 1.0, %v208_v5 }
 0x51f   :  { %v210_v7 = vmul.f32 %v694_v4, %v209_v6 }
 0x521   :  { %v211_v8 = vadd.f32 %v694_v4, %v210_v7 }
 0x523   :  { %v215_v11 = vsel %vm214_vm12, %v694_v4, %v211_v8 }
 0x524   :  { %v220_v14 = vsel %vm217_vm13, %v219_v12, %v215_v11  ;;  %v657_v11 = vld [vmem:[%s963_s0 + $0xa] sm:$0x3] }
 0x525   :  { %v223_v16 = vmul.f32 %v220_v14, %v165_v56 }
 0x582   :  { %v226_v13 = vpop.permute.xlu0 %225 }
 0x583   :  { %v228_v15 = vmul.f32 %v226_v13, %v220_v14 }
 0x585   :  { %230 = vrot.lane.b32.xlu1 %v228_v15, %s814_s10 }
 0x5f7   :  { %v231_v17 = vpop.permute.xlu1 %230 }
 0x5f8   :  { %v233_v18 = vadd.f32 %v231_v17, %v223_v16 }
 0x5fa   :  { %695 = vtanh.f32 %v233_v18 }
 0x600   :  { %v696_v19 = vpop.eup %695 }
 0x601   :  { %236 = vrot.lane.b32.xlu2 %v696_v19, %s813_s9 }
 0x65b   :  { %v237_v20 = vpop.permute.xlu2 %236 }
 0x65c   :  { %v239_v21 = vmul.f32 %v237_v20, %v220_v14 }
 0x65e   :  { %241 = vrot.lane.b32.xlu0 %v239_v21, %s814_s10 }
 0x6d0   :  { %v242_v22 = vpop.permute.xlu0 %241 }
 0x6d1   :  { %245 = vst.msk [vmem:[#allocation4 + $0x4] sm:$0x3] %vm27_vm0, %v242_v22  ;;  %652 = vmatmul.msk.f32.vlgmr.msra.gmra.mxu3 %vm38_vm1, %v242_v22 }
 0x754   :  { %v267_v24 = vpop.f32.mrf.mxu3 }
 0x755   :  { %v270_v25 = vadd.f32 %v651_v23, %v267_v24 }
 0x757   :  { %697 = vtanh.f32 %v270_v25  ;;  %v653_v27 = vmul.f32 -1.442695, %v270_v25 }
 0x759   :  { %699 = vpow2.f32 %v653_v27 }
 0x75d   :  { %v698_v26 = vpop.eup %697 }
 0x75e   :  { %293 = vrot.lane.b32.xlu1 %v698_v26, %s813_s9 }
 0x75f   :  { %v700_v28 = vpop.eup %699 }
 0x760   :  { %v274_v29 = vadd.f32 1.0, %v700_v28 }
 0x762   :  { %701 = vrcp.f32 %v274_v29  ;;  %v286_v35 = vand.u32 2147483648, %v274_v29  ;;  %vm280_vm15 = vweird.f32 %v274_v29  ;;  %v284_v36 = vand.u32 2147483647, %v274_v29 }
 0x764   :  { %v287_v38 = vor.u32 1.1754944e-38, %v286_v35  ;;  %vm285_vm3 = vcmp.eq.f32.partialorder %v284_v36, 8.507059e+37 }
 0x768   :  { %v702_v30 = vpop.eup %701 }
 0x769   :  { %v276_v31 = vmul.f32 %v702_v30, %v274_v29  ;;  %vm281_vm14 = vweird.f32 %v702_v30 }
 0x76a   :  { %vm282_vm2 = vmor %vm280_vm15, %vm281_vm14 }
 0x76b   :  { %v277_v32 = vsub.f32 1.0, %v276_v31 }
 0x76d   :  { %v278_v33 = vmul.f32 %v702_v30, %v277_v32 }
 0x76f   :  { %v279_v34 = vadd.f32 %v702_v30, %v278_v33 }
 0x771   :  { %v283_v37 = vsel %vm282_vm2, %v702_v30, %v279_v34 }
 0x772   :  { %v288_v40 = vsel %vm285_vm3, %v287_v38, %v283_v37  ;;  %v660_v37 = vld [vmem:[%s963_s0 + $0xc] sm:$0x3] }
 0x773   :  { %v291_v42 = vmul.f32 %v288_v40, %v233_v18 }
 0x7d0   :  { %v294_v39 = vpop.permute.xlu1 %293 }
 0x7d1   :  { %v296_v41 = vmul.f32 %v294_v39, %v288_v40 }
 0x7d3   :  { %298 = vrot.lane.b32.xlu2 %v296_v41, %s814_s10 }
 0x82d   :  { %v299_v43 = vpop.permute.xlu2 %298 }
 0x82e   :  { %v301_v44 = vadd.f32 %v299_v43, %v291_v42 }
 0x830   :  { %703 = vtanh.f32 %v301_v44 }
 0x836   :  { %v704_v45 = vpop.eup %703 }
 0x837   :  { %304 = vrot.lane.b32.xlu0 %v704_v45, %s813_s9 }
 0x8a9   :  { %v305_v46 = vpop.permute.xlu0 %304 }
 0x8aa   :  { %v307_v47 = vmul.f32 %v305_v46, %v288_v40 }
 0x8ac   :  { %309 = vrot.lane.b32.xlu1 %v307_v47, %s814_s10 }
 0x91e   :  { %v310_v48 = vpop.permute.xlu1 %309 }
 0x91f   :  { %313 = vst.msk [vmem:[#allocation4 + $0x6] sm:$0x3] %vm27_vm0, %v310_v48  ;;  %655 = vmatmul.msk.f32.vlgmr.msrb.gmra.mxu0 %vm38_vm1, %v310_v48 }
 0x99c   :  { %v335_v50 = vpop.f32.mrf.mxu0 }
 0x99d   :  { %v338_v51 = vadd.f32 %v654_v49, %v335_v50 }
 0x99f   :  { %705 = vtanh.f32 %v338_v51  ;;  %v656_v53 = vmul.f32 -1.442695, %v338_v51 }
 0x9a1   :  { %707 = vpow2.f32 %v656_v53 }
 0x9a5   :  { %v706_v52 = vpop.eup %705 }
 0x9a6   :  { %361 = vrot.lane.b32.xlu2 %v706_v52, %s813_s9 }
 0x9a7   :  { %v708_v54 = vpop.eup %707 }
 0x9a8   :  { %v342_v55 = vadd.f32 1.0, %v708_v54 }
 0x9aa   :  { %709 = vrcp.f32 %v342_v55  ;;  %v354_v61 = vand.u32 2147483648, %v342_v55  ;;  %vm348_vm5 = vweird.f32 %v342_v55  ;;  %v352_v62 = vand.u32 2147483647, %v342_v55 }
 0x9ac   :  { %v355_v0 = vor.u32 1.1754944e-38, %v354_v61  ;;  %vm353_vm7 = vcmp.eq.f32.partialorder %v352_v62, 8.507059e+37 }
 0x9b0   :  { %v710_v56 = vpop.eup %709 }
 0x9b1   :  { %v344_v57 = vmul.f32 %v710_v56, %v342_v55  ;;  %vm349_vm4 = vweird.f32 %v710_v56 }
 0x9b2   :  { %vm350_vm6 = vmor %vm348_vm5, %vm349_vm4 }
 0x9b3   :  { %v345_v58 = vsub.f32 1.0, %v344_v57 }
 0x9b5   :  { %v346_v59 = vmul.f32 %v710_v56, %v345_v58 }
 0x9b7   :  { %v347_v60 = vadd.f32 %v710_v56, %v346_v59 }
 0x9b9   :  { %v351_v63 = vsel %vm350_vm6, %v710_v56, %v347_v60 }
 0x9ba   :  { %v356_v2 = vsel %vm353_vm7, %v355_v0, %v351_v63  ;;  %v663_v63 = vld [vmem:[%s963_s0 + $0xe] sm:$0x3]  ;;  %s815_s0 = smov 96  }
 0x9bb   :  { %v359_v4 = vmul.f32 %v356_v2, %v301_v44 }
 0xa00   :  { %v362_v1 = vpop.permute.xlu2 %361 }
 0xa01   :  { %v364_v3 = vmul.f32 %v362_v1, %v356_v2 }
 0xa03   :  { %366 = vrot.lane.b32.xlu0 %v364_v3, %s814_s10 }
 0xa75   :  { %v367_v5 = vpop.permute.xlu0 %366 }
 0xa76   :  { %v369_v6 = vadd.f32 %v367_v5, %v359_v4 }
 0xa78   :  { %711 = vtanh.f32 %v369_v6 }
 0xa7e   :  { %v712_v7 = vpop.eup %711 }
 0xa7f   :  { %372 = vrot.lane.b32.xlu1 %v712_v7, %s813_s9 }
 0xaf1   :  { %v373_v8 = vpop.permute.xlu1 %372 }
 0xaf2   :  { %v375_v9 = vmul.f32 %v373_v8, %v356_v2 }
 0xaf4   :  { %377 = vrot.lane.b32.xlu2 %v375_v9, %s814_s10 }
 0xb4e   :  { %v378_v10 = vpop.permute.xlu2 %377 }
 0xb4f   :  { %381 = vst.msk [vmem:[#allocation4 + $0x8] sm:$0x3] %vm27_vm0, %v378_v10  ;;  %658 = vmatmul.msk.f32.vlgmr.msrb.gmra.mxu1 %vm38_vm1, %v378_v10 }
 0xbcc   :  { %v403_v12 = vpop.f32.mrf.mxu1 }
 0xbcd   :  { %v406_v13 = vadd.f32 %v657_v11, %v403_v12 }
 0xbcf   :  { %713 = vtanh.f32 %v406_v13  ;;  %v659_v15 = vmul.f32 -1.442695, %v406_v13 }
 0xbd1   :  { %715 = vpow2.f32 %v659_v15 }
 0xbd5   :  { %v714_v14 = vpop.eup %713 }
 0xbd6   :  { %429 = vrot.lane.b32.xlu0 %v714_v14, %s813_s9 }
 0xbd7   :  { %v716_v16 = vpop.eup %715 }
 0xbd8   :  { %v410_v17 = vadd.f32 1.0, %v716_v16 }
 0xbda   :  { %717 = vrcp.f32 %v410_v17  ;;  %v422_v23 = vand.u32 2147483648, %v410_v17  ;;  %vm416_vm9 = vweird.f32 %v410_v17  ;;  %v420_v24 = vand.u32 2147483647, %v410_v17 }
 0xbdc   :  { %v423_v26 = vor.u32 1.1754944e-38, %v422_v23  ;;  %vm421_vm11 = vcmp.eq.f32.partialorder %v420_v24, 8.507059e+37 }
 0xbe0   :  { %v718_v18 = vpop.eup %717 }
 0xbe1   :  { %v412_v19 = vmul.f32 %v718_v18, %v410_v17  ;;  %vm417_vm8 = vweird.f32 %v718_v18 }
 0xbe2   :  { %vm418_vm10 = vmor %vm416_vm9, %vm417_vm8 }
 0xbe3   :  { %v413_v20 = vsub.f32 1.0, %v412_v19 }
 0xbe5   :  { %v414_v21 = vmul.f32 %v718_v18, %v413_v20 }
 0xbe7   :  { %v415_v22 = vadd.f32 %v718_v18, %v414_v21 }
 0xbe9   :  { %v419_v25 = vsel %vm418_vm10, %v718_v18, %v415_v22 }
 0xbea   :  { %v424_v28 = vsel %vm421_vm11, %v423_v26, %v419_v25 }
 0xbeb   :  { %v427_v30 = vmul.f32 %v424_v28, %v369_v6 }
 0xc48   :  { %v430_v27 = vpop.permute.xlu0 %429 }
 0xc49   :  { %v432_v29 = vmul.f32 %v430_v27, %v424_v28 }
 0xc4b   :  { %434 = vrot.lane.b32.xlu1 %v432_v29, %s814_s10 }
 0xcbd   :  { %v435_v31 = vpop.permute.xlu1 %434 }
 0xcbe   :  { %v437_v32 = vadd.f32 %v435_v31, %v427_v30 }
 0xcc0   :  { %719 = vtanh.f32 %v437_v32 }
 0xcc6   :  { %v720_v33 = vpop.eup %719 }
 0xcc7   :  { %440 = vrot.lane.b32.xlu2 %v720_v33, %s813_s9 }
 0xd21   :  { %v441_v34 = vpop.permute.xlu2 %440 }
 0xd22   :  { %v443_v35 = vmul.f32 %v441_v34, %v424_v28 }
 0xd24   :  { %445 = vrot.lane.b32.xlu0 %v443_v35, %s814_s10 }
 0xd96   :  { %v446_v36 = vpop.permute.xlu0 %445 }
 0xd97   :  { %449 = vst.msk [vmem:[#allocation4 + $0xa] sm:$0x3] %vm27_vm0, %v446_v36  ;;  %661 = vmatmul.msk.f32.vlgmr.msrb.gmra.mxu2 %vm38_vm1, %v446_v36 }
 0xe1a   :  { %v471_v38 = vpop.f32.mrf.mxu2 }
 0xe1b   :  { %v474_v39 = vadd.f32 %v660_v37, %v471_v38 }
 0xe1d   :  { %721 = vtanh.f32 %v474_v39  ;;  %v662_v41 = vmul.f32 -1.442695, %v474_v39 }
 0xe1f   :  { %723 = vpow2.f32 %v662_v41 }
 0xe23   :  { %v722_v40 = vpop.eup %721 }
 0xe24   :  { %497 = vrot.lane.b32.xlu1 %v722_v40, %s813_s9 }
 0xe25   :  { %v724_v42 = vpop.eup %723 }
 0xe26   :  { %v478_v43 = vadd.f32 1.0, %v724_v42 }
 0xe28   :  { %725 = vrcp.f32 %v478_v43  ;;  %v490_v49 = vand.u32 2147483648, %v478_v43  ;;  %vm484_vm13 = vweird.f32 %v478_v43  ;;  %v488_v50 = vand.u32 2147483647, %v478_v43 }
 0xe2a   :  { %v491_v52 = vor.u32 1.1754944e-38, %v490_v49  ;;  %vm489_vm15 = vcmp.eq.f32.partialorder %v488_v50, 8.507059e+37 }
 0xe2e   :  { %v726_v44 = vpop.eup %725 }
 0xe2f   :  { %v480_v45 = vmul.f32 %v726_v44, %v478_v43  ;;  %vm485_vm12 = vweird.f32 %v726_v44 }
 0xe30   :  { %vm486_vm14 = vmor %vm484_vm13, %vm485_vm12 }
 0xe31   :  { %v481_v46 = vsub.f32 1.0, %v480_v45 }
 0xe33   :  { %v482_v47 = vmul.f32 %v726_v44, %v481_v46 }
 0xe35   :  { %v483_v48 = vadd.f32 %v726_v44, %v482_v47 }
 0xe37   :  { %v487_v51 = vsel %vm486_vm14, %v726_v44, %v483_v48 }
 0xe38   :  { %v492_v54 = vsel %vm489_vm15, %v491_v52, %v487_v51 }
 0xe39   :  { %v495_v56 = vmul.f32 %v492_v54, %v437_v32 }
 0xe96   :  { %v498_v53 = vpop.permute.xlu1 %497 }
 0xe97   :  { %v500_v55 = vmul.f32 %v498_v53, %v492_v54 }
 0xe99   :  { %502 = vrot.lane.b32.xlu2 %v500_v55, %s814_s10 }
 0xef3   :  { %v503_v57 = vpop.permute.xlu2 %502 }
 0xef4   :  { %v505_v58 = vadd.f32 %v503_v57, %v495_v56 }
 0xef6   :  { %727 = vtanh.f32 %v505_v58 }
 0xefc   :  { %v728_v59 = vpop.eup %727 }
 0xefd   :  { %508 = vrot.lane.b32.xlu0 %v728_v59, %s813_s9 }
 0xf6f   :  { %v509_v60 = vpop.permute.xlu0 %508 }
 0xf70   :  { %v511_v61 = vmul.f32 %v509_v60, %v492_v54 }
 0xf72   :  { %513 = vrot.lane.b32.xlu1 %v511_v61, %s814_s10 }
 0xfe4   :  { %v514_v62 = vpop.permute.xlu1 %513 }
 0xfe5   :  { %517 = vst.msk [vmem:[#allocation4 + $0xc] sm:$0x3] %vm27_vm0, %v514_v62  ;;  %664 = vmatmul.msk.f32.vlgmr.msrb.gmra.mxu3 %vm38_vm1, %v514_v62 }
0x1068   :  { %v539_v0 = vpop.f32.mrf.mxu3 }
0x1069   :  { %v542_v1 = vadd.f32 %v663_v63, %v539_v0 }
0x106b   :  { %729 = vtanh.f32 %v542_v1  ;;  %v665_v3 = vmul.f32 -1.442695, %v542_v1 }
0x106d   :  { %731 = vpow2.f32 %v665_v3 }
0x1071   :  { %v730_v2 = vpop.eup %729 }
0x1072   :  { %565 = vrot.lane.b32.xlu2 %v730_v2, %s813_s9 }
0x1073   :  { %v732_v4 = vpop.eup %731 }
0x1074   :  { %v546_v5 = vadd.f32 1.0, %v732_v4 }
0x1076   :  { %733 = vrcp.f32 %v546_v5  ;;  %v558_v11 = vand.u32 2147483648, %v546_v5  ;;  %vm552_vm2 = vweird.f32 %v546_v5  ;;  %v556_v12 = vand.u32 2147483647, %v546_v5 }
0x1078   :  { %v559_v14 = vor.u32 1.1754944e-38, %v558_v11  ;;  %vm557_vm4 = vcmp.eq.f32.partialorder %v556_v12, 8.507059e+37 }
0x107c   :  { %v734_v6 = vpop.eup %733 }
0x107d   :  { %v548_v7 = vmul.f32 %v734_v6, %v546_v5  ;;  %vm553_vm1 = vweird.f32 %v734_v6 }
0x107e   :  { %vm554_vm3 = vmor %vm552_vm2, %vm553_vm1 }
0x107f   :  { %v549_v8 = vsub.f32 1.0, %v548_v7 }
0x1081   :  { %v550_v9 = vmul.f32 %v734_v6, %v549_v8 }
0x1083   :  { %v551_v10 = vadd.f32 %v734_v6, %v550_v9 }
0x1085   :  { %v555_v13 = vsel %vm554_vm3, %v734_v6, %v551_v10 }
0x1086   :  { %v560_v16 = vsel %vm557_vm4, %v559_v14, %v555_v13 }
0x1087   :  { %v563_v18 = vmul.f32 %v560_v16, %v505_v58 }
0x10cc   :  { %v566_v15 = vpop.permute.xlu2 %565 }
0x10cd   :  { %v568_v17 = vmul.f32 %v566_v15, %v560_v16 }
0x10cf   :  { %570 = vrot.lane.b32.xlu0 %v568_v17, %s814_s10 }
0x1141   :  { %v571_v19 = vpop.permute.xlu0 %570 }
0x1142   :  { %v573_v20 = vadd.f32 %v571_v19, %v563_v18 }
0x1144   :  { %735 = vtanh.f32 %v573_v20  ;;  %588 = vrot.lane.b32.xlu0 %v573_v20, %s815_s0 }
0x114a   :  { %v736_v21 = vpop.eup %735 }
0x114b   :  { %576 = vrot.lane.b32.xlu1 %v736_v21, %s813_s9  ;;  %s623_s9 = sshll.u32 %s818_s8, 4  ;;  %s624_s9 = int_to_ptr.vmem [resolvable:$true] %s623_s9 }
0x11b6   :  { %v589_v22 = vpop.permute.xlu0 %588 }
0x11b7   :  { %591 = vst.msk [vmem:[#allocation3] sm:$0x3] %vm27_vm0, %v589_v22 }
0x11b8   :  { %593 = vst.msk [vmem:[#allocation8] sm:$0x3] %vm27_vm0, %v589_v22 }
0x11bd   :  { %v577_v23 = vpop.permute.xlu1 %576 }
0x11be   :  { %v579_v24 = vmul.f32 %v577_v23, %v560_v16 }
0x11c0   :  { %581 = vrot.lane.b32.xlu2 %v579_v24, %s814_s10 }
0x121a   :  { %v582_v25 = vpop.permute.xlu2 %581 }
0x121b   :  { %585 = vst.msk [vmem:[#allocation4 + $0xe] sm:$0x3] %vm27_vm0, %v582_v25 }
0x121c   :  { %586 = vst.msk [vmem:[#allocation2] sm:$0x3] %vm27_vm0, %v582_v25  ;;  %606 = dma.vmem_to_hbm [thread:$0]  %s599_s30, 256, %s601_s26, [#allocation5], %s814_s10, %s814_s10, %s819_s4  }
0x121d   :  { %592 = vst.msk [vmem:[#allocation6] sm:$0x3] %vm27_vm0, %v582_v25 }
0x121e   :  { %617 = dma.vmem_to_hbm [thread:$0]  %s613_s28, 32, %s615_s7, [#allocation7]  }
0x121f   :  { %628 = dma.vmem_to_hbm [thread:$0]  %s624_s9, 32, %s626_s12, [#allocation7]  }
0x1220   :  { %809 = dma.done.wait [#allocation5], 256  }
0x1221   :  { %810 = vsyncadd [#allocation5], 4294967040 }
0x1222   :  { %811 = dma.done.wait [#allocation7], 64  }
0x1223   :  { %812 = vsyncadd [#allocation7], 4294967232 }
0x1224   :  { %641 = vsyncpa [#allocation5], 1 }
0x1225   :  { %642 = vsyncpa [#allocation7], 1 }

</bundles_post_ra>
